<compile_context>
chip_gen: v6e
topology: v6e:2x2x1
jax: 0.10.0
libtpu: 0.0.40
codegen_flags: <defaults>
</compile_context>

<pallas_src>
import functools
import math

import jax
import jax.numpy as jnp
from jax import lax
from jax.experimental import pallas as pl
from jax.experimental.pallas import tpu as pltpu

# Small, forward-consistent sizes (d_model=32, nhead=4, dim_feedforward=64).
D_MODEL = 32
NHEAD = 4
HEAD_DIM = D_MODEL // NHEAD
DIM_FF = 64
LN_EPS = 1e-5


def _layer_norm(x, gamma, beta):
    mean = jnp.mean(x, axis=-1, keepdims=True)
    var = jnp.mean((x - mean) ** 2, axis=-1, keepdims=True)
    return (x - mean) * lax.rsqrt(var + LN_EPS) * gamma + beta


def transformer_kernel(x_ref, w_ref, vec_ref, o_ref, *, rows):
    """Single-step kernel on the flattened (R, D) operand, R = S * B.

    Row r corresponds to (seq = r // B, batch = r % B), i.e. seq-major order.
    """
    R = rows
    D, FF, H = D_MODEL, DIM_FF, NHEAD
    f32, bf16 = jnp.float32, jnp.bfloat16

    x = x_ref[...]                                   # (R, D) f32
    x_b = x.astype(bf16)

    # ---- bf16 weight slab slices ----
    wqkv = w_ref[0:D, :]                             # (D, 3D), scale folded in
    wo = w_ref[D:2 * D, 0:D]                         # (D, D)
    w1 = w_ref[D:2 * D, D:D + FF]                    # (D, FF)
    w2 = w_ref[2 * D:2 * D + FF, 0:D]                # (FF, D)
    hmask = w_ref[2 * D + FF:2 * D + FF + H * R, 0:D]  # (H*R, D) 0/1 per-head

    # ---- f32 vector slab slices ----
    bqkv = vec_ref[0:1, :]                           # (1, 3D)
    bo = vec_ref[1:2, 0:D]
    b1 = vec_ref[1:2, D:D + FF]
    b2 = vec_ref[2:3, 0:D]
    g1 = vec_ref[2:3, D:2 * D]
    be1 = vec_ref[2:3, 2 * D:3 * D]
    g2 = vec_ref[3:4, 0:D]
    be2 = vec_ref[3:4, D:2 * D]
    mask_add = vec_ref[8:8 + R, 0:H * R]             # (R, H*R) additive mask

    # ---- fused QKV projection (softmax scale folded into Q cols / bias) ----
    qkv = jnp.dot(x_b, wqkv, preferred_element_type=f32) + bqkv   # (R, 3D)
    qkv_b = qkv.astype(bf16)
    q = qkv_b[:, 0:D]
    k = qkv_b[:, D:2 * D]
    v = qkv_b[:, 2 * D:3 * D]

    # ---- block-replicated K/V: off-head dims zeroed -> 2 wide matmuls ----
    k_blk = jnp.concatenate([k] * H, axis=0) * hmask               # (H*R, D)
    v_blk = jnp.concatenate([v] * H, axis=0) * hmask               # (H*R, D)

    # Scores for all heads in one push: contract on D -> (R, H*R).
    s = lax.dot_general(q, k_blk, (((1,), (1,)), ((), ())),
                        preferred_element_type=f32)
    s = s + mask_add                                 # batch separation
    m = jnp.max(s, axis=-1, keepdims=True)           # global row max (valid)
    e = jnp.exp(s - m).astype(bf16)                  # masked entries exactly 0

    # One matmul -> [unnormalized ctx | per-head denominators] (R, 2D).
    w_cd = jnp.concatenate([v_blk, hmask], axis=1)                 # (H*R, 2D)
    t = jnp.dot(e, w_cd, preferred_element_type=f32)
    ctx = t[:, 0:D] * pl.reciprocal(t[:, D:2 * D], approx=True)    # (R, D)

    # ---- output projection + residual + LayerNorm 1 ----
    attn = jnp.dot(ctx.astype(bf16), wo, preferred_element_type=f32) + bo
    y = _layer_norm(x + attn, g1, be1)

    # ---- feed-forward + residual + LayerNorm 2 ----
    h1 = jnp.maximum(
        jnp.dot(y.astype(bf16), w1, preferred_element_type=f32) + b1, 0.0)
    ff = jnp.dot(h1.astype(bf16), w2, preferred_element_type=f32) + b2
    o_ref[...] = _layer_norm(y + ff, g2, be2)


def prepare_params(p, seq_len, batch):
    """One-time (hoisted) packing: 3 kernel inputs total (x, wslab, vecslab)."""
    d, ff, h = D_MODEL, DIM_FF, NHEAD
    R = seq_len * batch
    # Slab layout assumptions for this toy config.
    assert d + ff <= 3 * d, "W1 / b1 must fit the 3D-wide slabs"
    assert h * R <= 3 * d, "batch mask must fit the 3D-wide vector slab"
    scale = 1.0 / math.sqrt(HEAD_DIM)

    w_in_t = p["in_proj_weight"].T                    # (D, 3D)
    wqkv = w_in_t.at[:, :d].multiply(scale)           # fold softmax scale
    wo = p["out_proj_weight"].T                       # (D, D)
    w1_t = p["linear1_weight"].T                      # (D, FF)
    w2_t = p["linear2_weight"].T                      # (FF, D)

    # Per-head 0/1 mask: row block h selects dims of head h.
    blk_head = jnp.arange(h * R) // R                 # (H*R,)
    dim_head = jnp.arange(d) // HEAD_DIM              # (D,)
    head_mask = (blk_head[:, None] == dim_head[None, :]).astype(jnp.float32)

    n_rows = 2 * d + ff + h * R
    wslab = jnp.zeros((n_rows, 3 * d), jnp.float32)
    wslab = wslab.at[0:d, :].set(wqkv)
    wslab = wslab.at[d:2 * d, 0:d].set(wo)
    wslab = wslab.at[d:2 * d, d:d + ff].set(w1_t)
    wslab = wslab.at[2 * d:2 * d + ff, 0:d].set(w2_t)
    wslab = wslab.at[2 * d + ff:2 * d + ff + h * R, 0:d].set(head_mask)
    wslab = wslab.astype(jnp.bfloat16)

    b_in = p["in_proj_bias"]
    bqkv = b_in.at[:d].multiply(scale)

    # Additive same-batch mask, tiled across the H column blocks.
    row_b = jnp.arange(R) % batch
    col_b = jnp.tile(jnp.arange(R) % batch, h)        # (H*R,)
    mask_add = jnp.where(row_b[:, None] == col_b[None, :],
                         jnp.float32(0.0), jnp.float32(-1e30))

    vecslab = jnp.zeros((8 + R, 3 * d), jnp.float32)
    vecslab = vecslab.at[0, :].set(bqkv)
    vecslab = vecslab.at[1, 0:d].set(p["out_proj_bias"])
    vecslab = vecslab.at[1, d:d + ff].set(p["linear1_bias"])
    vecslab = vecslab.at[2, 0:d].set(p["linear2_bias"])
    vecslab = vecslab.at[2, d:2 * d].set(p["norm1_weight"])
    vecslab = vecslab.at[2, 2 * d:3 * d].set(p["norm1_bias"])
    vecslab = vecslab.at[3, 0:d].set(p["norm2_weight"])
    vecslab = vecslab.at[3, d:2 * d].set(p["norm2_bias"])
    vecslab = vecslab.at[8:8 + R, 0:h * R].set(mask_add)
    return wslab, vecslab


@jax.jit
def simple_transformer(x_sbd, wslab, vecslab):
    """x_sbd: (S, B, D) float32, PyTorch MultiheadAttention default layout."""
    S, B, D = x_sbd.shape
    R = S * B
    # Free row-major reshape (no transpose): rows ordered (s-major, b-minor).
    x2 = x_sbd.reshape(R, D)

    vmem = pl.BlockSpec(memory_space=pltpu.MemorySpace.VMEM)
    out = pl.pallas_call(
        functools.partial(transformer_kernel, rows=R),
        out_shape=jax.ShapeDtypeStruct((R, D), jnp.float32),
        in_specs=[vmem, vmem, vmem],
        out_specs=vmem,
    )(x2, wslab, vecslab)
    return out.reshape(S, B, D)


def reference(x, p):
    """Pure-JAX f32 replica of the PyTorch forward (eval mode)."""
    S, B, D = x.shape
    qkv = jnp.einsum('sbd,ed->sbe', x, p["in_proj_weight"]) + p["in_proj_bias"]
    q, k, v = jnp.split(qkv, 3, axis=-1)
    heads = lambda t: t.reshape(S, B, NHEAD, HEAD_DIM).transpose(1, 2, 0, 3)
    qh, kh, vh = heads(q), heads(k), heads(v)
    scores = jnp.einsum('bhqd,bhkd->bhqk', qh, kh) / math.sqrt(HEAD_DIM)
    pa = jax.nn.softmax(scores, axis=-1)
    o = jnp.einsum('bhqk,bhkd->bhqd', pa, vh).transpose(2, 0, 1, 3).reshape(S, B, D)
    attn = jnp.einsum('sbd,ed->sbe', o, p["out_proj_weight"]) + p["out_proj_bias"]

    def ln(t, g, b):
        m = t.mean(-1, keepdims=True)
        var = ((t - m) ** 2).mean(-1, keepdims=True)
        return (t - m) / jnp.sqrt(var + LN_EPS) * g + b

    y = ln(x + attn, p["norm1_weight"], p["norm1_bias"])
    h1 = jax.nn.relu(jnp.einsum('sbd,fd->sbf', y, p["linear1_weight"]) + p["linear1_bias"])
    ff = jnp.einsum('sbf,df->sbd', h1, p["linear2_weight"]) + p["linear2_bias"]
    return ln(y + ff, p["norm2_weight"], p["norm2_bias"])


if __name__ == "__main__":
    key = jax.random.PRNGKey(0)
    ks = jax.random.split(key, 16)
    S, B = 8, 2

    f32 = jnp.float32
    params = {
        "in_proj_weight":  0.05 * jax.random.normal(ks[0], (3 * D_MODEL, D_MODEL), f32),
        "in_proj_bias":    0.05 * jax.random.normal(ks[1], (3 * D_MODEL,), f32),
        "out_proj_weight": 0.05 * jax.random.normal(ks[2], (D_MODEL, D_MODEL), f32),
        "out_proj_bias":   0.05 * jax.random.normal(ks[3], (D_MODEL,), f32),
        "linear1_weight":  0.05 * jax.random.normal(ks[4], (DIM_FF, D_MODEL), f32),
        "linear1_bias":    0.05 * jax.random.normal(ks[5], (DIM_FF,), f32),
        "linear2_weight":  0.05 * jax.random.normal(ks[6], (D_MODEL, DIM_FF), f32),
        "linear2_bias":    0.05 * jax.random.normal(ks[7], (D_MODEL,), f32),
        "norm1_weight":    1.0 + 0.05 * jax.random.normal(ks[8], (D_MODEL,), f32),
        "norm1_bias":      0.05 * jax.random.normal(ks[9], (D_MODEL,), f32),
        "norm2_weight":    1.0 + 0.05 * jax.random.normal(ks[10], (D_MODEL,), f32),
        "norm2_bias":      0.05 * jax.random.normal(ks[11], (D_MODEL,), f32),
    }
    x = jax.random.normal(ks[12], (S, B, D_MODEL), f32)

    wslab, vecslab = prepare_params(params, S, B)   # one-time, outside hot path
    out = jax.block_until_ready(simple_transformer(x, wslab, vecslab))
    ref = reference(x, params)

    assert out.shape == (S, B, D_MODEL), out.shape
    # Tolerance covers bf16 matmul operands + approx (EUP) softmax reciprocal
    # against the pure-f32 reference.
    if not jnp.allclose(out, ref, atol=1e-2, rtol=1e-2):
        raise AssertionError("Pallas output does not match JAX reference")
    print("KERNEL_OK")
</pallas_src>

<mosaic_0001>
module attributes {stable_mosaic.version = 11 : i64} {
  func.func @transformer_kernel(%arg0: memref<16x32xf32, #tpu.memory_space<vmem>>, %arg1: memref<192x96xbf16, #tpu.memory_space<vmem>>, %arg2: memref<24x96xf32, #tpu.memory_space<vmem>>, %arg3: memref<16x32xf32, #tpu.memory_space<vmem>>) attributes {dimension_semantics = [], scalar_prefetch = 0 : i64, scratch_operands = 0 : i64, tpu.core_type = #tpu.core_type<tc>} {
    %c0 = arith.constant 0 : index
    %c0_0 = arith.constant 0 : index
    %0 = vector.load %arg0[%c0, %c0_0] : memref<16x32xf32, #tpu.memory_space<vmem>>, vector<16x32xf32>
    %1 = arith.truncf %0 : vector<16x32xf32> to vector<16x32xbf16>
    %c0_1 = arith.constant 0 : index
    %c0_2 = arith.constant 0 : index
    %2 = vector.load %arg1[%c0_1, %c0_2] : memref<192x96xbf16, #tpu.memory_space<vmem>>, vector<32x96xbf16>
    %c32 = arith.constant 32 : index
    %c0_3 = arith.constant 0 : index
    %3 = vector.load %arg1[%c32, %c0_3] : memref<192x96xbf16, #tpu.memory_space<vmem>>, vector<32x32xbf16>
    %c32_4 = arith.constant 32 : index
    %c32_5 = arith.constant 32 : index
    %4 = vector.load %arg1[%c32_4, %c32_5] : memref<192x96xbf16, #tpu.memory_space<vmem>>, vector<32x64xbf16>
    %c64 = arith.constant 64 : index
    %c0_6 = arith.constant 0 : index
    %5 = vector.load %arg1[%c64, %c0_6] : memref<192x96xbf16, #tpu.memory_space<vmem>>, vector<64x32xbf16>
    %c128 = arith.constant 128 : index
    %c0_7 = arith.constant 0 : index
    %6 = vector.load %arg1[%c128, %c0_7] : memref<192x96xbf16, #tpu.memory_space<vmem>>, vector<64x32xbf16>
    %c0_8 = arith.constant 0 : index
    %c0_9 = arith.constant 0 : index
    %7 = vector.load %arg2[%c0_8, %c0_9] : memref<24x96xf32, #tpu.memory_space<vmem>>, vector<1x96xf32>
    %c1 = arith.constant 1 : index
    %c0_10 = arith.constant 0 : index
    %8 = vector.load %arg2[%c1, %c0_10] : memref<24x96xf32, #tpu.memory_space<vmem>>, vector<1x32xf32>
    %c1_11 = arith.constant 1 : index
    %c32_12 = arith.constant 32 : index
    %9 = vector.load %arg2[%c1_11, %c32_12] : memref<24x96xf32, #tpu.memory_space<vmem>>, vector<1x64xf32>
    %c2 = arith.constant 2 : index
    %c0_13 = arith.constant 0 : index
    %10 = vector.load %arg2[%c2, %c0_13] : memref<24x96xf32, #tpu.memory_space<vmem>>, vector<1x32xf32>
    %c2_14 = arith.constant 2 : index
    %c32_15 = arith.constant 32 : index
    %11 = vector.load %arg2[%c2_14, %c32_15] : memref<24x96xf32, #tpu.memory_space<vmem>>, vector<1x32xf32>
    %c2_16 = arith.constant 2 : index
    %c64_17 = arith.constant 64 : index
    %12 = vector.load %arg2[%c2_16, %c64_17] : memref<24x96xf32, #tpu.memory_space<vmem>>, vector<1x32xf32>
    %c3 = arith.constant 3 : index
    %c0_18 = arith.constant 0 : index
    %13 = vector.load %arg2[%c3, %c0_18] : memref<24x96xf32, #tpu.memory_space<vmem>>, vector<1x32xf32>
    %c3_19 = arith.constant 3 : index
    %c32_20 = arith.constant 32 : index
    %14 = vector.load %arg2[%c3_19, %c32_20] : memref<24x96xf32, #tpu.memory_space<vmem>>, vector<1x32xf32>
    %c8 = arith.constant 8 : index
    %c0_21 = arith.constant 0 : index
    %15 = vector.load %arg2[%c8, %c0_21] : memref<24x96xf32, #tpu.memory_space<vmem>>, vector<16x64xf32>
    %cst = arith.constant dense<0.000000e+00> : vector<16x96xf32>
    %16 = tpu.matmul %1, %2, %cst {dimension_numbers = #tpu.dot_dimension_numbers<[1], [0], [0], [1], [0, 0, 1, 1], [], []>} : vector<16x32xbf16>, vector<32x96xbf16>, vector<16x96xf32> -> vector<16x96xf32>
    %17 = vector.broadcast %7 : vector<1x96xf32> to vector<16x96xf32>
    %18 = arith.addf %16, %17 : vector<16x96xf32>
    %19 = arith.truncf %18 : vector<16x96xf32> to vector<16x96xbf16>
    %20 = vector.extract_strided_slice %19 {offsets = [0, 0], sizes = [16, 32], strides = [1, 1]} : vector<16x96xbf16> to vector<16x32xbf16>
    %21 = vector.extract_strided_slice %19 {offsets = [0, 32], sizes = [16, 32], strides = [1, 1]} : vector<16x96xbf16> to vector<16x32xbf16>
    %22 = vector.extract_strided_slice %19 {offsets = [0, 64], sizes = [16, 32], strides = [1, 1]} : vector<16x96xbf16> to vector<16x32xbf16>
    %23 = tpu.concatenate %21, %21, %21, %21 in 0 : vector<16x32xbf16>, vector<16x32xbf16>, vector<16x32xbf16>, vector<16x32xbf16> -> vector<64x32xbf16>
    %24 = arith.mulf %23, %6 : vector<64x32xbf16>
    %25 = tpu.concatenate %22, %22, %22, %22 in 0 : vector<16x32xbf16>, vector<16x32xbf16>, vector<16x32xbf16>, vector<16x32xbf16> -> vector<64x32xbf16>
    %26 = arith.mulf %25, %6 : vector<64x32xbf16>
    %cst_22 = arith.constant dense<0.000000e+00> : vector<16x64xf32>
    %27 = tpu.matmul %20, %24, %cst_22 {dimension_numbers = #tpu.dot_dimension_numbers<[1], [1], [0], [0], [0, 0, 1, 0], [], []>} : vector<16x32xbf16>, vector<64x32xbf16>, vector<16x64xf32> -> vector<16x64xf32>
    %28 = arith.addf %27, %15 : vector<16x64xf32>
    %cst_23 = arith.constant dense<0xFF800000> : vector<16xf32>
    %29 = vector.multi_reduction <maximumf>, %28, %cst_23 [1] : vector<16x64xf32> to vector<16xf32>
    %30 = vector.shape_cast %29 : vector<16xf32> to vector<16x1xf32>
    %31 = vector.broadcast %30 : vector<16x1xf32> to vector<16x64xf32>
    %32 = arith.subf %28, %31 : vector<16x64xf32>
    %33 = math.exp %32 : vector<16x64xf32>
    %34 = arith.truncf %33 : vector<16x64xf32> to vector<16x64xbf16>
    %35 = tpu.concatenate %26, %6 in 1 : vector<64x32xbf16>, vector<64x32xbf16> -> vector<64x64xbf16>
    %cst_24 = arith.constant dense<0.000000e+00> : vector<16x64xf32>
    %36 = tpu.matmul %34, %35, %cst_24 {dimension_numbers = #tpu.dot_dimension_numbers<[1], [0], [0], [1], [0, 0, 1, 1], [], []>} : vector<16x64xbf16>, vector<64x64xbf16>, vector<16x64xf32> -> vector<16x64xf32>
    %37 = vector.extract_strided_slice %36 {offsets = [0, 0], sizes = [16, 32], strides = [1, 1]} : vector<16x64xf32> to vector<16x32xf32>
    %38 = vector.extract_strided_slice %36 {offsets = [0, 32], sizes = [16, 32], strides = [1, 1]} : vector<16x64xf32> to vector<16x32xf32>
    %39 = tpu.reciprocal %38 {approx = true} : vector<16x32xf32> -> vector<16x32xf32>
    %40 = arith.mulf %37, %39 : vector<16x32xf32>
    %41 = arith.truncf %40 : vector<16x32xf32> to vector<16x32xbf16>
    %cst_25 = arith.constant dense<0.000000e+00> : vector<16x32xf32>
    %42 = tpu.matmul %41, %3, %cst_25 {dimension_numbers = #tpu.dot_dimension_numbers<[1], [0], [0], [1], [0, 0, 1, 1], [], []>} : vector<16x32xbf16>, vector<32x32xbf16>, vector<16x32xf32> -> vector<16x32xf32>
    %43 = vector.broadcast %8 : vector<1x32xf32> to vector<16x32xf32>
    %44 = arith.addf %42, %43 : vector<16x32xf32>
    %45 = arith.addf %0, %44 : vector<16x32xf32>
    %cst_26 = arith.constant dense<0.000000e+00> : vector<16xf32>
    %46 = vector.multi_reduction <add>, %45, %cst_26 [1] : vector<16x32xf32> to vector<16xf32>
    %47 = vector.shape_cast %46 : vector<16xf32> to vector<16x1xf32>
    %cst_27 = arith.constant 3.200000e+01 : f32
    %48 = vector.broadcast %cst_27 : f32 to vector<16x1xf32>
    %49 = arith.divf %47, %48 : vector<16x1xf32>
    %50 = vector.broadcast %49 : vector<16x1xf32> to vector<16x32xf32>
    %51 = arith.subf %45, %50 : vector<16x32xf32>
    %52 = arith.mulf %51, %51 : vector<16x32xf32>
    %cst_28 = arith.constant dense<0.000000e+00> : vector<16xf32>
    %53 = vector.multi_reduction <add>, %52, %cst_28 [1] : vector<16x32xf32> to vector<16xf32>
    %54 = vector.shape_cast %53 : vector<16xf32> to vector<16x1xf32>
    %cst_29 = arith.constant 3.200000e+01 : f32
    %55 = vector.broadcast %cst_29 : f32 to vector<16x1xf32>
    %56 = arith.divf %54, %55 : vector<16x1xf32>
    %57 = vector.broadcast %49 : vector<16x1xf32> to vector<16x32xf32>
    %58 = arith.subf %45, %57 : vector<16x32xf32>
    %cst_30 = arith.constant 9.99999974E-6 : f32
    %59 = vector.broadcast %cst_30 : f32 to vector<16x1xf32>
    %60 = arith.addf %56, %59 : vector<16x1xf32>
    %61 = math.rsqrt %60 : vector<16x1xf32>
    %62 = vector.broadcast %61 : vector<16x1xf32> to vector<16x32xf32>
    %63 = arith.mulf %58, %62 : vector<16x32xf32>
    %64 = vector.broadcast %11 : vector<1x32xf32> to vector<16x32xf32>
    %65 = arith.mulf %63, %64 : vector<16x32xf32>
    %66 = vector.broadcast %12 : vector<1x32xf32> to vector<16x32xf32>
    %67 = arith.addf %65, %66 : vector<16x32xf32>
    %68 = arith.truncf %67 : vector<16x32xf32> to vector<16x32xbf16>
    %cst_31 = arith.constant dense<0.000000e+00> : vector<16x64xf32>
    %69 = tpu.matmul %68, %4, %cst_31 {dimension_numbers = #tpu.dot_dimension_numbers<[1], [0], [0], [1], [0, 0, 1, 1], [], []>} : vector<16x32xbf16>, vector<32x64xbf16>, vector<16x64xf32> -> vector<16x64xf32>
    %70 = vector.broadcast %9 : vector<1x64xf32> to vector<16x64xf32>
    %71 = arith.addf %69, %70 : vector<16x64xf32>
    %cst_32 = arith.constant 0.000000e+00 : f32
    %72 = vector.broadcast %cst_32 : f32 to vector<16x64xf32>
    %73 = arith.maximumf %71, %72 : vector<16x64xf32>
    %74 = arith.truncf %73 : vector<16x64xf32> to vector<16x64xbf16>
    %cst_33 = arith.constant dense<0.000000e+00> : vector<16x32xf32>
    %75 = tpu.matmul %74, %5, %cst_33 {dimension_numbers = #tpu.dot_dimension_numbers<[1], [0], [0], [1], [0, 0, 1, 1], [], []>} : vector<16x64xbf16>, vector<64x32xbf16>, vector<16x32xf32> -> vector<16x32xf32>
    %76 = vector.broadcast %10 : vector<1x32xf32> to vector<16x32xf32>
    %77 = arith.addf %75, %76 : vector<16x32xf32>
    %78 = arith.addf %67, %77 : vector<16x32xf32>
    %cst_34 = arith.constant dense<0.000000e+00> : vector<16xf32>
    %79 = vector.multi_reduction <add>, %78, %cst_34 [1] : vector<16x32xf32> to vector<16xf32>
    %80 = vector.shape_cast %79 : vector<16xf32> to vector<16x1xf32>
    %cst_35 = arith.constant 3.200000e+01 : f32
    %81 = vector.broadcast %cst_35 : f32 to vector<16x1xf32>
    %82 = arith.divf %80, %81 : vector<16x1xf32>
    %83 = vector.broadcast %82 : vector<16x1xf32> to vector<16x32xf32>
    %84 = arith.subf %78, %83 : vector<16x32xf32>
    %85 = arith.mulf %84, %84 : vector<16x32xf32>
    %cst_36 = arith.constant dense<0.000000e+00> : vector<16xf32>
    %86 = vector.multi_reduction <add>, %85, %cst_36 [1] : vector<16x32xf32> to vector<16xf32>
    %87 = vector.shape_cast %86 : vector<16xf32> to vector<16x1xf32>
    %cst_37 = arith.constant 3.200000e+01 : f32
    %88 = vector.broadcast %cst_37 : f32 to vector<16x1xf32>
    %89 = arith.divf %87, %88 : vector<16x1xf32>
    %90 = vector.broadcast %82 : vector<16x1xf32> to vector<16x32xf32>
    %91 = arith.subf %78, %90 : vector<16x32xf32>
    %cst_38 = arith.constant 9.99999974E-6 : f32
    %92 = vector.broadcast %cst_38 : f32 to vector<16x1xf32>
    %93 = arith.addf %89, %92 : vector<16x1xf32>
    %94 = math.rsqrt %93 : vector<16x1xf32>
    %95 = vector.broadcast %94 : vector<16x1xf32> to vector<16x32xf32>
    %96 = arith.mulf %91, %95 : vector<16x32xf32>
    %97 = vector.broadcast %13 : vector<1x32xf32> to vector<16x32xf32>
    %98 = arith.mulf %96, %97 : vector<16x32xf32>
    %99 = vector.broadcast %14 : vector<1x32xf32> to vector<16x32xf32>
    %100 = arith.addf %98, %99 : vector<16x32xf32>
    %c0_39 = arith.constant 0 : index
    %c0_40 = arith.constant 0 : index
    %101 = vector.load %arg3[%c0_39, %c0_40] : memref<16x32xf32, #tpu.memory_space<vmem>>, vector<16x32xf32>
    tpu.vector_store %arg3[%c0_39, %c0_40], %100 {strides = array<i32>} : memref<16x32xf32, #tpu.memory_space<vmem>>, vector<16x32xf32>,
    return
  }
}

</mosaic_0001>

<bundles_post_ra>
// kernel: simple_transformer.1
= control target key start
LH: loop header
LB: loop body
LE: loop exit
PB: predicated region body
PF: predicated region fallthrough
CT: control target
= control target key end

     0   :  { %8 = vsyncpa [#allocation3], 0  ;;  %s1057_s0 = inlined_call_operand.hbm [shape: f32[16,32], index: 0, kind: input, shape index: {}]   ;;  %s1058_s1 = inlined_call_operand.hbm [shape: bf16[192,96], index: 1, kind: input, shape index: {}]   ;;  %s1059_s2 = inlined_call_operand.hbm [shape: f32[24,96], index: 2, kind: input, shape index: {}]   ;;  %s1060_s3 = inlined_call_operand.hbm [shape: f32[16,32], index: 3, kind: output, shape index: {}]  }
   0x1   :  { %9 = vsyncpa [#allocation6], 0 }
   0x2   :  { %10 = vsyncpa [#allocation4], 0  ;;  %s893_s12 = smov [#allocation5]  }
   0x3   :  { %s28_s13 = sshll.u32 %s893_s12, 4  ;;  %s29_s13 = int_to_ptr.vmem [resolvable:$true] %s28_s13 }
   0x4   :  { %s815_s14 = scalar_lea.vmem %s29_s13, 1536  ;;  %p820_p1 = scmp.lt.s32.totalorder %s29_s13, %s29_s13 }
   0x5   :  { %p816_p0 = scmp.ne.s32.totalorder %s29_s13, %s815_s14  ;;  %p821_p2 = scmp.lt.s32.totalorder %s815_s14, %s815_s14 }
   0x7   :  { %p822_p3 = por %p821_p2, %p820_p1 }
   0x9   :  { %p823_p4 = pnand %p822_p3, %p816_p0 }
   0xb   :  { %826 = shalt.err (!%p823_p4)
}
   0xc   :  { %s894_s15 = smov 64   ;;  %s895_s16 = smov 4  }
   0xd   :  { %34 = dma.hbm_to_vmem [thread:$0]  %s1058_s1, 1536, %s29_s13, [#allocation6], %s894_s15, %s894_s15, %s895_s16  }
   0xe   :  { %s896_s19 = smov [#allocation2]  }
   0xf   :  { %s16_s20 = sshll.u32 %s896_s19, 4  ;;  %s17_s20 = int_to_ptr.vmem [resolvable:$true] %s16_s20 }
  0x10   :  { %s835_s21 = scalar_lea.vmem %s17_s20, 256  ;;  %p840_p6 = scmp.lt.s32.totalorder %s17_s20, %s17_s20 }
  0x11   :  { %p836_p5 = scmp.ne.s32.totalorder %s17_s20, %s835_s21  ;;  %p841_p7 = scmp.lt.s32.totalorder %s835_s21, %s835_s21 }
  0x13   :  { %p842_p8 = por %p841_p7, %p840_p6 }
  0x15   :  { %p843_p9 = pnand %p842_p8, %p836_p5 }
  0x17   :  { %846 = shalt.err (!%p843_p9)
}
  0x18   :  { %s897_s22 = smov 128   ;;  %s898_s23 = smov 8  }
  0x19   :  { %22 = dma.hbm_to_vmem [thread:$0]  %s1057_s0, 256, %s17_s20, [#allocation3], %s897_s22, %s897_s22, %s898_s23  }
  0x1a   :  { %s899_s1 = smov [#allocation7]  }
  0x1b   :  { %s40_s26 = sshll.u32 %s899_s1, 4  ;;  %s41_s26 = int_to_ptr.vmem [resolvable:$true] %s40_s26 }
  0x1c   :  { %s855_s27 = scalar_lea.vmem %s41_s26, 384  ;;  %p860_p11 = scmp.lt.s32.totalorder %s41_s26, %s41_s26 }
  0x1d   :  { %p856_p10 = scmp.ne.s32.totalorder %s41_s26, %s855_s27  ;;  %p861_p12 = scmp.lt.s32.totalorder %s855_s27, %s855_s27 }
  0x1f   :  { %p862_p13 = por %p861_p12, %p860_p11 }
  0x21   :  { %p863_p0 = pnand %p862_p13, %p856_p10 }
  0x23   :  { %866 = shalt.err (!%p863_p0)
}
  0x24   :  { %46 = dma.hbm_to_vmem [thread:$0]  %s1059_s2, 384, %s41_s26, [#allocation6], %s897_s22, %s897_s22, %s898_s23  }
  0x25   :  { %887 = dma.done.wait [#allocation3], 256  }
  0x26   :  { %888 = vsyncadd [#allocation3], 4294967040 }
  0x27   :  { %889 = dma.done.wait [#allocation6], 1920  }
  0x28   :  { %890 = vsyncadd [#allocation6], 4294965376  ;;  %v900_v0 = vmov 0.0   ;;  %vm901_vm0 = vmmov 0   ;;  %v779_v1 = vld [vmem:[#allocation5 + $0x8] sm:$0xff]   ;;  %v780_v2 = vld [vmem:[#allocation5] sm:$0xff]  }
  0x29   :  { %707 = vmatprep.subr.bf16.mxu0 %v900_v0  ;;  %711 = vmatprep.mubr.msk.bf16.mxu0 %vm901_vm0, %v900_v0  ;;  %v948_v3 = vld [vmem:[#allocation2] sm:$0xff]  ;;  %v950_v4 = vld [vmem:[#allocation2 + $0x8] sm:$0xff]  ;;  %v782_v6 = vld [vmem:[#allocation5 + $0x48] sm:$0xff]   ;;  %s902_s0 = smov 32   ;;  %vm106_vm1 = vcmask 261120   ;;  %s903_s2 = smov 96  }
  0x2a   :  { %715 = vmatprep.subr.bf16.mxu1 %v900_v0  ;;  %723 = vmatprep.mubr.msk.bf16.mxu1 %vm901_vm0, %v900_v0  ;;  %v781_v5 = vld [vmem:[#allocation5 + $0x58] sm:$0xff]   ;;  %v59_v7 = vpack.c.bf16 %v950_v4, %v948_v3  ;;  %v783_v8 = vld [vmem:[#allocation5 + $0x50] sm:$0xff]   ;;  %v784_v9 = vld [vmem:[#allocation5 + $0x40] sm:$0xff]   ;;  %vm272_vm2 = vcmask 523264   ;;  %s904_s30 = smov [#allocation8]  }
  0x2b   :  { %708 = vmatpush3.bf16.msra.mxu0 %v779_v1  ;;  %178 = vrot.lane.b32.xlu0 %v781_v5, %s902_s0  ;;  %v661_v12 = vld [vmem:[#allocation7] ss:$0 sm:$0xff]  ;;  %v88_v44 = vld [vmem:[#allocation7 + $0x8] sm:$0xff]  ;;  %v89_v48 = vld [vmem:[#allocation7 + $0x10] sm:$0xff]  ;;  %s648_s4 = sshll.u32 %s904_s30, 4  ;;  %s649_s4 = int_to_ptr.vmem [resolvable:$true] %s648_s4 }
  0x2c   :  { %709 = vmatprep.subr.bf16.mxu0 %v900_v0  ;;  %174 = vrot.lane.b32.xlu1 %v782_v6, %s902_s0  ;;  %s867_s5 = scalar_lea.vmem %s649_s4, 256  ;;  %p872_p2 = scmp.lt.s32.totalorder %s649_s4, %s649_s4 }
  0x2d   :  { %p868_p1 = scmp.ne.s32.totalorder %s649_s4, %s867_s5  ;;  %p873_p3 = scmp.lt.s32.totalorder %s867_s5, %s867_s5 }
  0x2f   :  { %710 = vmatpush3.bf16.msra.mxu0 %v780_v2  ;;  %176 = vrot.lane.b32.xlu0 %v783_v8, %s902_s0  ;;  %p874_p4 = por %p873_p3, %p872_p2 }
  0x30   :  { %727 = vmatprep.subr.bf16.mxu0 %v900_v0  ;;  %172 = vrot.lane.b32.xlu1 %v784_v9, %s902_s0 }
  0x31   :  { %p875_p5 = pnand %p874_p4, %p868_p1 }
  0x32   :  { %712 = vmatmul.mubr.msk.bf16.vlgmr.msra.gmra.mxu0 %vm106_vm1, %v59_v7 }
  0x33   :  { %735 = vmatprep.mubr.msk.bf16.mxu0 %vm901_vm0, %v900_v0 }
  0x9d   :  { %v179_v11 = vpop.permute.xlu0 %178 }
  0x9e   :  { %v959_v14 = vpop.permute.xlu1 %174 }
  0xa1   :  { %v177_v19 = vpop.permute.xlu0 %176 }
  0xa2   :  { %v965_v23 = vpop.permute.xlu1 %172 }
  0xf2   :  { %v144_v10 = vpop.f32.mrf.mxu0 }
  0xf3   :  { %v145_v16 = vadd.f32 %v661_v12, %v144_v10 }
  0xf4   :  { %v713_v13 = vpop.f32.mrf.mxu0 }
  0xf6   :  { %v147_v15 = vpop.f32.mrf.mxu0 }
  0xf7   :  { %v148_v17 = vadd.f32 %v661_v12, %v147_v15  ;;  %v786_v12 = vld [vmem:[#allocation5 + $0x10] sm:$0xff]  }
  0xf8   :  { %v714_v18 = vpop.f32.mrf.mxu0 }
  0xf9   :  { %v961_v20 = vpack.c.bf16 %v148_v17, %v145_v16 }
  0xfb   :  { %v186_v21 = vmul.bf16 %v177_v19, %v961_v20  ;;  %v187_v22 = vmul.bf16 %v179_v11, %v961_v20  ;;  %v184_v24 = vmul.bf16 %v965_v23, %v961_v20  ;;  %v185_v25 = vmul.bf16 %v959_v14, %v961_v20 }
  0xfd   :  { %214 = vrot.lane.b32.xlu0 %v187_v22, %s903_s2  ;;  %212 = vrot.lane.b32.xlu1 %v186_v21, %s903_s2  ;;  %v671_v21 = vld [vmem:[#allocation7 + $0x1] ss:$0 sm:$0xff] }
 0x101   :  { %210 = vrot.lane.b32.xlu0 %v185_v25, %s903_s2  ;;  %208 = vrot.lane.b32.xlu1 %v184_v24, %s903_s2 }
 0x105   :  { %194 = vrot.lane.b32.xlu0 %v781_v5, %s894_s15  ;;  %192 = vrot.lane.b32.xlu1 %v783_v8, %s894_s15 }
 0x109   :  { %190 = vrot.lane.b32.xlu0 %v782_v6, %s894_s15  ;;  %188 = vrot.lane.b32.xlu1 %v784_v9, %s894_s15  ;;  %v785_v9 = vld [vmem:[#allocation5 + $0x18] sm:$0xff]  }
 0x16f   :  { %v215_v26 = vpop.permute.xlu0 %214  ;;  %v213_v27 = vpop.permute.xlu1 %212 }
 0x170   :  { %v229_v28 = vsel %vm106_vm1, %v215_v26, 0  ;;  %v226_v33 = vsel %vm106_vm1, %v213_v27, 0 }
 0x171   :  { %716 = vmatpush3.bf16.xpose.msra.mxu1 %v229_v28 }
 0x172   :  { %717 = vmatprep.subr.bf16.mxu1 %v900_v0 }
 0x173   :  { %v211_v29 = vpop.permute.xlu0 %210  ;;  %v209_v30 = vpop.permute.xlu1 %208 }
 0x174   :  { %v223_v36 = vsel %vm106_vm1, %v211_v29, 0  ;;  %v220_v37 = vsel %vm106_vm1, %v209_v30, 0 }
 0x177   :  { %v195_v31 = vpop.permute.xlu0 %194  ;;  %v193_v32 = vpop.permute.xlu1 %192 }
 0x178   :  { %v203_v34 = vmul.bf16 %v195_v31, %v961_v20  ;;  %v202_v35 = vmul.bf16 %v193_v32, %v961_v20  ;;  %v1026_v32 = vld [vmem:[#allocation7 + $0x2] ss:$0 sm:$0xff] }
 0x179   :  { %718 = vmatpush3.bf16.xpose.msra.mxu1 %v226_v33 }
 0x17a   :  { %296 = vrot.lane.b32.xlu0 %v203_v34, %s894_s15  ;;  %294 = vrot.lane.b32.xlu1 %v202_v35, %s894_s15 }
 0x17b   :  { %719 = vmatprep.subr.bf16.mxu1 %v900_v0  ;;  %v191_v38 = vpop.permute.xlu0 %190  ;;  %v189_v39 = vpop.permute.xlu1 %188 }
 0x17c   :  { %v200_v54 = vmul.bf16 %v189_v39, %v961_v20  ;;  %v201_v55 = vmul.bf16 %v191_v38, %v961_v20 }
 0x181   :  { %720 = vmatpush3.bf16.xpose.msra.mxu1 %v223_v36 }
 0x182   :  { %721 = vmatprep.subr.bf16.mxu1 %v900_v0 }
 0x189   :  { %722 = vmatpush3.bf16.xpose.msra.mxu1 %v220_v37 }
 0x18a   :  { %755 = vmatprep.subr.bf16.mxu1 %v900_v0 }
 0x190   :  { %724 = vmatmul.mubr.msk.bf16.vlgmr.msra.gmra.mxu1 %vm106_vm1, %v961_v20 }
 0x191   :  { %763 = vmatprep.mubr.msk.bf16.mxu1 %vm901_vm0, %v900_v0 }
 0x1ec   :  { %v297_v40 = vpop.permute.xlu0 %296  ;;  %v295_v42 = vpop.permute.xlu1 %294 }
 0x1ed   :  { %v312_v41 = vsel %vm106_vm1, %v297_v40, %v179_v11  ;;  %v308_v43 = vsel %vm106_vm1, %v295_v42, %v177_v19 }
 0x1ee   :  { %728 = vmatpush3.bf16.msra.mxu0 %v312_v41 }
 0x1ef   :  { %729 = vmatprep.subr.bf16.mxu0 %v900_v0 }
 0x1f2   :  { %730 = vmatpush3.bf16.msra.mxu0 %v308_v43 }
 0x1f3   :  { %731 = vmatprep.subr.bf16.mxu0 %v900_v0 }
 0x250   :  { %v265_v45 = vpop.f32.mrf.mxu1 }
 0x251   :  { %v266_v46 = vadd.f32 %v265_v45, %v88_v44  ;;  %v787_v44 = vld [vmem:[#allocation5 + $0x38] sm:$0xff]   ;;  %v788_v45 = vld [vmem:[#allocation5 + $0x30] sm:$0xff]  }
 0x252   :  { %v725_v47 = vpop.f32.mrf.mxu1  ;;  %756 = vmatpush3.bf16.msra.mxu1 %v787_v44 }
 0x253   :  { %v273_v49 = vsel %vm272_vm2, %v266_v46, -inf  ;;  %757 = vmatprep.subr.bf16.mxu1 %v900_v0 }
 0x254   :  { %274 = vmax.xlane.f32.xlu0 %v273_v49  ;;  %v268_v50 = vpop.f32.mrf.mxu1 }
 0x255   :  { %v269_v51 = vadd.f32 %v268_v50, %v89_v48 }
 0x256   :  { %v726_v52 = vpop.f32.mrf.mxu1  ;;  %758 = vmatpush3.bf16.msra.mxu1 %v788_v45 }
 0x257   :  { %v276_v53 = vsel %vm272_vm2, %v269_v51, -inf  ;;  %759 = vmatprep.subr.bf16.mxu1 %v900_v0 }
 0x258   :  { %277 = vmax.xlane.f32.xlu1 %v276_v53 }
 0x269   :  { %290 = vrot.lane.b32.xlu1 %v200_v54, %s894_s15 }
 0x26a   :  { %292 = vrot.lane.b32.xlu0 %v201_v55, %s894_s15 }
 0x2dd   :  { %v275_v56 = vpop.xlane.xlu0 %274 }
 0x2de   :  { %v279_v57 = vsub.f32 %v266_v46, %v275_v56 }
 0x2e0   :  { %v281_v58 = vmul.f32 1.442695, %v279_v57 }
 0x2e1   :  { %v293_v59 = vpop.permute.xlu0 %292  ;;  %v278_v60 = vpop.xlane.xlu1 %277 }
 0x2e2   :  { %v304_v61 = vsel %vm106_vm1, %v293_v59, %v959_v14  ;;  %v280_v62 = vsub.f32 %v269_v51, %v278_v60  ;;  %791 = vpow2.f32 %v281_v58 }
 0x2e3   :  { %732 = vmatpush3.bf16.msra.mxu0 %v304_v61 }
 0x2e4   :  { %v283_v63 = vmul.f32 1.442695, %v280_v62  ;;  %733 = vmatprep.subr.bf16.mxu0 %v900_v0  ;;  %v789_v62 = vld [vmem:[#allocation5 + $0x28] sm:$0xff]  }
 0x2e5   :  { %v291_v1 = vpop.permute.xlu1 %290  ;;  %760 = vmatpush3.bf16.msra.mxu1 %v789_v62 }
 0x2e6   :  { %793 = vpow2.f32 %v283_v63  ;;  %v300_v2 = vsel %vm106_vm1, %v291_v1, %v965_v23  ;;  %761 = vmatprep.subr.bf16.mxu1 %v900_v0  ;;  %v790_v63 = vld [vmem:[#allocation5 + $0x20] sm:$0xff]  }
 0x2e7   :  { %734 = vmatpush3.bf16.msra.mxu0 %v300_v2 }
 0x2e8   :  { %739 = vmatprep.subr.bf16.mxu0 %v900_v0 }
 0x2e9   :  { %762 = vmatpush3.bf16.msra.mxu1 %v790_v63 }
 0x2ef   :  { %v792_v5 = vpop.eup %791 }
 0x2f3   :  { %v794_v6 = vpop.eup %793 }
 0x2f4   :  { %v285_v7 = vpack.c.bf16 %v794_v6, %v792_v5 }
 0x2f6   :  { %736 = vmatmul.mubr.msk.bf16.vlgmr.msra.gmra.mxu0 %vm272_vm2, %v285_v7 }
 0x2f7   :  { %743 = vmatprep.mubr.msk.bf16.mxu0 %vm901_vm0, %v900_v0  ;;  %740 = vmatpush3.bf16.msra.mxu0 %v785_v9 }
 0x2f8   :  { %741 = vmatprep.subr.bf16.mxu0 %v900_v0 }
 0x2fb   :  { %742 = vmatpush3.bf16.msra.mxu0 %v786_v12 }
 0x2fc   :  { %747 = vmatprep.subr.bf16.mxu0 %v900_v0 }
 0x3b6   :  { %v351_v8 = vpop.f32.mrf.mxu0 }
 0x3b7   :  { %795 = vrcp.f32 %v351_v8 }
 0x3b8   :  { %v737_v10 = vpop.f32.mrf.mxu0 }
 0x3ba   :  { %v354_v11 = vpop.f32.mrf.mxu0 }
 0x3bb   :  { %797 = vrcp.f32 %v354_v11 }
 0x3bc   :  { %v738_v13 = vpop.f32.mrf.mxu0 }
 0x3c4   :  { %v796_v14 = vpop.eup %795 }
 0x3c5   :  { %362 = vrot.lane.b32.xlu0 %v796_v14, %s903_s2 }
 0x3c8   :  { %v798_v15 = vpop.eup %797 }
 0x3c9   :  { %364 = vrot.lane.b32.xlu1 %v798_v15, %s903_s2 }
 0x437   :  { %v363_v16 = vpop.permute.xlu0 %362 }
 0x438   :  { %v368_v18 = vmul.f32 %v363_v16, %v351_v8 }
 0x43b   :  { %v365_v17 = vpop.permute.xlu1 %364 }
 0x43c   :  { %v369_v19 = vmul.f32 %v365_v17, %v354_v11 }
 0x43e   :  { %v370_v20 = vpack.c.bf16 %v369_v19, %v368_v18 }
 0x440   :  { %744 = vmatmul.mubr.msk.bf16.vlgmr.msra.gmra.mxu0 %vm106_vm1, %v370_v20 }
 0x441   :  { %751 = vmatprep.mubr.msk.bf16.mxu0 %vm901_vm0, %v900_v0 }
 0x500   :  { %v424_v22 = vpop.f32.mrf.mxu0 }
 0x501   :  { %v425_v23 = vadd.f32 %v671_v21, %v424_v22 }
 0x502   :  { %v745_v24 = vpop.f32.mrf.mxu0 }
 0x503   :  { %v431_v25 = vadd.f32 %v425_v23, %v948_v3 }
 0x504   :  { %v427_v26 = vpop.f32.mrf.mxu0 }
 0x505   :  { %v428_v27 = vadd.f32 %v671_v21, %v427_v26  ;;  %v433_v28 = vsel %vm106_vm1, %v431_v25, 0.0 }
 0x506   :  { %434 = vadd.xlane.f32.xlu0 %v433_v28  ;;  %v746_v29 = vpop.f32.mrf.mxu0 }
 0x507   :  { %v432_v30 = vadd.f32 %v428_v27, %v950_v4 }
 0x509   :  { %v436_v31 = vsel %vm106_vm1, %v432_v30, 0.0 }
 0x50a   :  { %437 = vadd.xlane.f32.xlu1 %v436_v31 }
 0x51b   :  { %478 = vrot.lane.b32.xlu1 %v785_v9, %s903_s2 }
 0x51f   :  { %470 = vrot.lane.b32.xlu1 %v1026_v32, %s894_s15 }
 0x523   :  { %476 = vrot.lane.b32.xlu1 %v786_v12, %s903_s2 }
 0x58f   :  { %v435_v3 = vpop.xlane.xlu0 %434 }
 0x590   :  { %v440_v33 = vmul.f32 0.03125, %v435_v3 }
 0x592   :  { %v442_v34 = vsub.f32 %v431_v25, %v440_v33 }
 0x593   :  { %v438_v35 = vpop.xlane.xlu1 %437 }
 0x594   :  { %v441_v36 = vmul.f32 0.03125, %v438_v35  ;;  %v444_v37 = vmul.f32 %v442_v34, %v442_v34 }
 0x596   :  { %v443_v38 = vsub.f32 %v432_v30, %v441_v36  ;;  %v446_v4 = vsel %vm106_vm1, %v444_v37, 0.0 }
 0x597   :  { %447 = vadd.xlane.f32.xlu0 %v446_v4  ;;  %v479_v41 = vpop.permute.xlu1 %478 }
 0x598   :  { %v445_v39 = vmul.f32 %v443_v38, %v443_v38  ;;  %748 = vmatpush3.bf16.msra.mxu0 %v479_v41 }
 0x599   :  { %749 = vmatprep.subr.bf16.mxu0 %v900_v0 }
 0x59a   :  { %v449_v40 = vsel %vm106_vm1, %v445_v39, 0.0 }
 0x59b   :  { %450 = vadd.xlane.f32.xlu0 %v449_v40  ;;  %v471_v42 = vpop.permute.xlu1 %470 }
 0x59f   :  { %v477_v43 = vpop.permute.xlu1 %476 }
 0x5a0   :  { %750 = vmatpush3.bf16.msra.mxu0 %v477_v43 }
 0x5b1   :  { %465 = vrot.lane.b32.xlu0 %v1026_v32, %s903_s2 }
 0x5b5   :  { %483 = vrot.lane.b32.xlu0 %v671_v21, %s903_s2 }
 0x620   :  { %v448_v46 = vpop.xlane.xlu0 %447 }
 0x621   :  { %v452_v47 = vmul.f32 0.03125, %v448_v46 }
 0x623   :  { %v454_v48 = vadd.f32 1e-05, %v452_v47 }
 0x624   :  { %v451_v49 = vpop.xlane.xlu0 %450 }
 0x625   :  { %799 = vrsqrt.f32 %v454_v48  ;;  %v453_v50 = vmul.f32 0.03125, %v451_v49 }
 0x627   :  { %v455_v51 = vadd.f32 1e-05, %v453_v50 }
 0x628   :  { %v466_v54 = vpop.permute.xlu0 %465 }
 0x629   :  { %801 = vrsqrt.f32 %v455_v51 }
 0x62c   :  { %v484_v1 = vpop.permute.xlu0 %483 }
 0x632   :  { %v800_v52 = vpop.eup %799 }
 0x633   :  { %v458_v53 = vmul.f32 %v800_v52, %v442_v34 }
 0x635   :  { %v468_v57 = vmul.f32 %v466_v54, %v458_v53 }
 0x636   :  { %v802_v55 = vpop.eup %801 }
 0x637   :  { %v459_v56 = vmul.f32 %v802_v55, %v443_v38  ;;  %v473_v59 = vadd.f32 %v471_v42, %v468_v57 }
 0x639   :  { %v469_v58 = vmul.f32 %v466_v54, %v459_v56 }
 0x63b   :  { %v474_v60 = vadd.f32 %v471_v42, %v469_v58 }
 0x63d   :  { %v475_v61 = vpack.c.bf16 %v474_v60, %v473_v59 }
 0x63f   :  { %752 = vmatmul.mubr.msk.bf16.vlgmr.msra.gmra.mxu0 %vm106_vm1, %v475_v61 }
 0x6ff   :  { %v523_v2 = vpop.f32.mrf.mxu0 }
 0x700   :  { %v524_v6 = vadd.f32 %v523_v2, %v484_v1 }
 0x701   :  { %v753_v5 = vpop.f32.mrf.mxu0 }
 0x702   :  { %v530_v10 = vmax.f32 %v524_v6, 0.0 }
 0x703   :  { %v526_v7 = vpop.f32.mrf.mxu0 }
 0x704   :  { %v527_v8 = vadd.f32 %v526_v7, %v484_v1 }
 0x705   :  { %v754_v9 = vpop.f32.mrf.mxu0 }
 0x706   :  { %v531_v11 = vmax.f32 %v527_v8, 0.0 }
 0x708   :  { %v532_v12 = vpack.c.bf16 %v531_v11, %v530_v10 }
 0x70a   :  { %764 = vmatmul.mubr.msk.bf16.vlgmr.msra.gmra.mxu1 %vm272_vm2, %v532_v12 }
 0x7ca   :  { %v594_v13 = vpop.f32.mrf.mxu1 }
 0x7cb   :  { %v595_v14 = vadd.f32 %v1026_v32, %v594_v13 }
 0x7cc   :  { %v765_v15 = vpop.f32.mrf.mxu1 }
 0x7cd   :  { %v601_v16 = vadd.f32 %v595_v14, %v473_v59 }
 0x7ce   :  { %v597_v0 = vpop.f32.mrf.mxu1 }
 0x7cf   :  { %v598_v17 = vadd.f32 %v1026_v32, %v597_v0  ;;  %v603_v18 = vsel %vm106_vm1, %v601_v16, 0.0  ;;  %v682_v32 = vld [vmem:[#allocation7 + $0x3] ss:$0 sm:$0xff] }
 0x7d0   :  { %604 = vadd.xlane.f32.xlu1 %v603_v18  ;;  %v766_v19 = vpop.f32.mrf.mxu1 }
 0x7d1   :  { %v602_v20 = vadd.f32 %v598_v17, %v474_v60 }
 0x7d3   :  { %v606_v21 = vsel %vm106_vm1, %v602_v20, 0.0 }
 0x7d4   :  { %607 = vadd.xlane.f32.xlu0 %v606_v21 }
 0x859   :  { %v605_v22 = vpop.xlane.xlu1 %604 }
 0x85a   :  { %v609_v23 = vmul.f32 0.03125, %v605_v22 }
 0x85c   :  { %v611_v24 = vsub.f32 %v601_v16, %v609_v23 }
 0x85d   :  { %v608_v25 = vpop.xlane.xlu0 %607 }
 0x85e   :  { %v610_v26 = vmul.f32 0.03125, %v608_v25  ;;  %v613_v27 = vmul.f32 %v611_v24, %v611_v24 }
 0x860   :  { %v612_v28 = vsub.f32 %v602_v20, %v610_v26  ;;  %v615_v29 = vsel %vm106_vm1, %v613_v27, 0.0 }
 0x861   :  { %616 = vadd.xlane.f32.xlu0 %v615_v29 }
 0x862   :  { %v614_v30 = vmul.f32 %v612_v28, %v612_v28 }
 0x864   :  { %v618_v31 = vsel %vm106_vm1, %v614_v30, 0.0 }
 0x865   :  { %619 = vadd.xlane.f32.xlu1 %v618_v31 }
 0x877   :  { %636 = vrot.lane.b32.xlu0 %v682_v32, %s903_s2 }
 0x8ea   :  { %v617_v3 = vpop.xlane.xlu0 %616 }
 0x8eb   :  { %v621_v33 = vmul.f32 0.03125, %v617_v3 }
 0x8ed   :  { %v623_v34 = vadd.f32 1e-05, %v621_v33 }
 0x8ee   :  { %v620_v35 = vpop.xlane.xlu1 %619  ;;  %v637_v39 = vpop.permute.xlu0 %636 }
 0x8ef   :  { %803 = vrsqrt.f32 %v623_v34  ;;  %v622_v36 = vmul.f32 0.03125, %v620_v35 }
 0x8f1   :  { %v624_v37 = vadd.f32 1e-05, %v622_v36 }
 0x8f3   :  { %805 = vrsqrt.f32 %v624_v37 }
 0x8fc   :  { %v804_v38 = vpop.eup %803 }
 0x8fd   :  { %v627_v4 = vmul.f32 %v804_v38, %v611_v24 }
 0x8ff   :  { %v633_v40 = vmul.f32 %v682_v32, %v627_v4 }
 0x900   :  { %v806_v41 = vpop.eup %805 }
 0x901   :  { %v628_v42 = vmul.f32 %v806_v41, %v612_v28  ;;  %v639_v43 = vadd.f32 %v637_v39, %v633_v40 }
 0x903   :  { %v634_v44 = vmul.f32 %v682_v32, %v628_v42  ;;  %641 = vst.msk [vmem:[#allocation8] sm:$0xff] %vm106_vm1, %v639_v43 }
 0x905   :  { %v640_v45 = vadd.f32 %v637_v39, %v634_v44 }
 0x907   :  { %642 = vst.msk [vmem:[#allocation8 + $0x8] sm:$0xff] %vm106_vm1, %v640_v45 }
 0x908   :  { %878 = shalt.err (!%p875_p5)
}
 0x909   :  { %654 = dma.vmem_to_hbm [thread:$0]  %s649_s4, 256, %s1060_s3, [#allocation4], %s897_s22, %s897_s22, %s898_s23  }
 0x90a   :  { %891 = dma.done.wait [#allocation4], 256  }
 0x90b   :  { %892 = vsyncadd [#allocation4], 4294967040 }
 0x90c   :  { %658 = vsyncpa [#allocation3], 1 }
 0x90d   :  { %659 = vsyncpa [#allocation6], 1 }
 0x90e   :  { %660 = vsyncpa [#allocation4], 1 }

</bundles_post_ra>
